<compile_context>
chip_gen: v7x
topology: tpu7x:2x2x1
jax: 0.10.0
libtpu: 0.0.40
codegen_flags: <defaults>
</compile_context>

<pallas_src>
import functools

import jax
import jax.numpy as jnp
from jax.experimental import pallas as pl
from jax.experimental.pallas import tpu as pltpu

_LANE = 128
_SUBLANE = 8


def _round_up(x, m):
    return (x + m - 1) // m * m


def _pad2d(a, rows, cols):
    r, c = a.shape
    if r == rows and c == cols:
        return a
    return jnp.pad(a, ((0, rows - r), (0, cols - c)))


# ----------------------------------------------------------------------------
# Kernels
# ----------------------------------------------------------------------------
def _residual_proj_kernel(x_ref, w1_ref, b1_ref, w2_ref, b2_ref,
                          w3_ref, b3_ref, o_ref):
    """Fused: relu(fc1) -> fc2 ; projection fc3 on the skip ; relu(sum)."""
    x = x_ref[...]
    y = jnp.dot(x, w1_ref[...], preferred_element_type=jnp.float32) + b1_ref[...]
    y = jnp.maximum(y, 0.0)                                          # relu(fc1)
    y = jnp.dot(y.astype(w2_ref.dtype), w2_ref[...],
                preferred_element_type=jnp.float32) + b2_ref[...]    # fc2
    r = jnp.dot(x, w3_ref[...],
                preferred_element_type=jnp.float32) + b3_ref[...]    # fc3 skip
    o_ref[...] = jnp.maximum(y + r, 0.0).astype(o_ref.dtype)


def _residual_ident_kernel(x_ref, w1_ref, b1_ref, w2_ref, b2_ref, o_ref):
    """Fused: relu(fc1) -> fc2 ; identity skip ; relu(sum)."""
    x = x_ref[...]
    y = jnp.dot(x, w1_ref[...], preferred_element_type=jnp.float32) + b1_ref[...]
    y = jnp.maximum(y, 0.0)
    y = jnp.dot(y.astype(w2_ref.dtype), w2_ref[...],
                preferred_element_type=jnp.float32) + b2_ref[...]
    o_ref[...] = jnp.maximum(y + x.astype(jnp.float32), 0.0).astype(o_ref.dtype)


# ----------------------------------------------------------------------------
# One-time parameter preparation (hoisted out of the hot path)
# ----------------------------------------------------------------------------
def prepare_params(params, *, use_projection, weight_dtype=None):
    """Transpose PyTorch [out,in] weights to [in,out] and pad lane-dense.

    Called ONCE at parameter-load time; the per-call forward only consumes the
    already-prepared (padded, transposed) arrays.
    Optionally cast weights (e.g. jnp.bfloat16 on v6e/v7x); accumulation stays
    f32 inside the kernel.
    """
    Cout, Cin = params["w1"].shape
    Cin_p = _round_up(Cin, _LANE)
    Cout_p = _round_up(Cout, _LANE)
    cast = (lambda a: a.astype(weight_dtype)) if weight_dtype is not None else (lambda a: a)

    prep = {
        "w1": _pad2d(cast(params["w1"].T), Cin_p, Cout_p),
        "b1": _pad2d(params["b1"].reshape(1, Cout), 1, Cout_p),
        "w2": _pad2d(cast(params["w2"].T), Cout_p, Cout_p),
        "b2": _pad2d(params["b2"].reshape(1, Cout), 1, Cout_p),
    }
    if use_projection:
        prep["w3"] = _pad2d(cast(params["w3"].T), Cin_p, Cout_p)
        prep["b3"] = _pad2d(params["b3"].reshape(1, Cout), 1, Cout_p)
    return prep


# ----------------------------------------------------------------------------
# Forward
# ----------------------------------------------------------------------------
@functools.partial(jax.jit,
                   static_argnames=("use_projection", "out_channels", "block_b"))
def residual_forward(x, prep, *, use_projection, out_channels, block_b=256):
    """x: [B, C_in]. prep: output of prepare_params(). Returns [B, out_channels]."""
    B, Cin = x.shape
    Cin_p, Cout_p = prep["w1"].shape

    if not use_projection:
        assert Cin == out_channels, "identity skip requires in_channels == out_channels"
        assert Cin_p == Cout_p

    # Batch tile: multiple of 8 sublanes, capped at block_b.
    tb = min(block_b, _round_up(B, _SUBLANE))
    tb = _round_up(tb, _SUBLANE)
    B_p = _round_up(B, tb)
    nb = B_p // tb

    x_p = _pad2d(x, B_p, Cin_p)

    # BlockSpecs: X/out move with the batch grid step; weights/biases use a
    # constant block index so they stay VMEM-resident (single DMA).
    x_spec = pl.BlockSpec((tb, Cin_p), lambda i: (i, 0))
    out_spec = pl.BlockSpec((tb, Cout_p), lambda i: (i, 0))
    const = lambda shape: pl.BlockSpec(shape, lambda i: (0, 0))
    out_shape = jax.ShapeDtypeStruct((B_p, Cout_p), x.dtype)

    # Cost estimate (helps XLA schedule surrounding ops).
    n_mm = 3 if use_projection else 2
    flops = 2 * B_p * (Cin_p * Cout_p + Cout_p * Cout_p
                       + (Cin_p * Cout_p if use_projection else 0))
    weight_bytes = sum(int(v.size) * v.dtype.itemsize for v in prep.values())
    io_bytes = int(x_p.size) * x_p.dtype.itemsize + B_p * Cout_p * x.dtype.itemsize
    cost = pl.CostEstimate(flops=flops, transcendentals=0,
                           bytes_accessed=weight_bytes + io_bytes)

    # VMEM budget: resident weights + double-buffered X/out tiles, with
    # headroom, capped well under v7x's 64 MiB physical VMEM.
    tile_bytes = 2 * (tb * Cin_p + tb * Cout_p) * 4
    needed = weight_bytes + 2 * tile_bytes
    vmem_limit = int(min(max(2 * needed, 32 * 1024 * 1024), 60 * 1024 * 1024))

    cparams = pltpu.CompilerParams(
        dimension_semantics=("parallel",),
        vmem_limit_bytes=vmem_limit,
    )

    if use_projection:
        out_p = pl.pallas_call(
            _residual_proj_kernel,
            out_shape=out_shape,
            grid=(nb,),
            in_specs=[
                x_spec,
                const((Cin_p, Cout_p)), const((1, Cout_p)),
                const((Cout_p, Cout_p)), const((1, Cout_p)),
                const((Cin_p, Cout_p)), const((1, Cout_p)),
            ],
            out_specs=out_spec,
            compiler_params=cparams,
            cost_estimate=cost,
        )(x_p, prep["w1"], prep["b1"], prep["w2"], prep["b2"],
          prep["w3"], prep["b3"])
    else:
        out_p = pl.pallas_call(
            _residual_ident_kernel,
            out_shape=out_shape,
            grid=(nb,),
            in_specs=[
                x_spec,
                const((Cin_p, Cout_p)), const((1, Cout_p)),
                const((Cout_p, Cout_p)), const((1, Cout_p)),
            ],
            out_specs=out_spec,
            compiler_params=cparams,
            cost_estimate=cost,
        )(x_p, prep["w1"], prep["b1"], prep["w2"], prep["b2"])

    return out_p[:B, :out_channels]


# ----------------------------------------------------------------------------
# Reference + test harness
# ----------------------------------------------------------------------------
def _reference(x, params, use_projection):
    relu = lambda v: jnp.maximum(v, 0.0)
    y = relu(x @ params["w1"].T + params["b1"])
    y = y @ params["w2"].T + params["b2"]
    r = (x @ params["w3"].T + params["b3"]) if use_projection else x
    return relu(y + r)


def _init_params(key, in_channels, out_channels, use_projection):
    ks = jax.random.split(key, 6)
    scale1 = 1.0 / jnp.sqrt(in_channels)
    scale2 = 1.0 / jnp.sqrt(out_channels)
    p = {
        "w1": jax.random.uniform(ks[0], (out_channels, in_channels),
                                 jnp.float32, -scale1, scale1),
        "b1": jax.random.uniform(ks[1], (out_channels,), jnp.float32, -scale1, scale1),
        "w2": jax.random.uniform(ks[2], (out_channels, out_channels),
                                 jnp.float32, -scale2, scale2),
        "b2": jax.random.uniform(ks[3], (out_channels,), jnp.float32, -scale2, scale2),
    }
    if use_projection:
        p["w3"] = jax.random.uniform(ks[4], (out_channels, in_channels),
                                     jnp.float32, -scale1, scale1),
        p["w3"] = p["w3"][0]
        p["b3"] = jax.random.uniform(ks[5], (out_channels,), jnp.float32, -scale1, scale1)
    return p


if __name__ == "__main__":
    key = jax.random.PRNGKey(0)
    kx, kp, kp2, kx3 = jax.random.split(key, 4)

    # Case 1: projection skip (in_channels != out_channels)
    B, Cin, Cout = 8, 16, 32
    x = jax.random.normal(kx, (B, Cin), jnp.float32)
    params = _init_params(kp, Cin, Cout, use_projection=True)
    prep = prepare_params(params, use_projection=True)
    out = residual_forward(x, prep, use_projection=True, out_channels=Cout)
    out = jax.block_until_ready(out)
    ref = _reference(x, params, True)
    assert out.shape == (B, Cout)
    assert jnp.max(jnp.abs(out - ref)) < 1e-4

    # Case 2: identity skip (in_channels == out_channels)
    x2 = jax.random.normal(kx, (B, Cout), jnp.float32)
    params2 = _init_params(kp2, Cout, Cout, use_projection=False)
    prep2 = prepare_params(params2, use_projection=False)
    out2 = residual_forward(x2, prep2, use_projection=False, out_channels=Cout)
    out2 = jax.block_until_ready(out2)
    ref2 = _reference(x2, params2, False)
    assert jnp.max(jnp.abs(out2 - ref2)) < 1e-4

    # Case 3: multi-step batch grid (exercises pipelined, padded batch tiles)
    B3 = 40
    x3 = jax.random.normal(kx3, (B3, Cin), jnp.float32)
    out3 = residual_forward(x3, prep, use_projection=True,
                            out_channels=Cout, block_b=16)
    out3 = jax.block_until_ready(out3)
    ref3 = _reference(x3, params, True)
    assert out3.shape == (B3, Cout)
    assert jnp.max(jnp.abs(out3 - ref3)) < 1e-4

    print("KERNEL_OK")
</pallas_src>

<mosaic_0001>
module attributes {stable_mosaic.version = 11 : i64} {
  func.func @_residual_proj_kernel(%arg0: i32, %arg1: memref<8x128xf32, #tpu.memory_space<vmem>>, %arg2: memref<128x128xf32, #tpu.memory_space<vmem>>, %arg3: memref<1x128xf32, #tpu.memory_space<vmem>>, %arg4: memref<128x128xf32, #tpu.memory_space<vmem>>, %arg5: memref<1x128xf32, #tpu.memory_space<vmem>>, %arg6: memref<128x128xf32, #tpu.memory_space<vmem>>, %arg7: memref<1x128xf32, #tpu.memory_space<vmem>>, %arg8: memref<8x128xf32, #tpu.memory_space<vmem>>) attributes {dimension_semantics = [#tpu.dimension_semantics<parallel>], iteration_bounds = array<i64: 1>, scalar_prefetch = 0 : i64, scratch_operands = 0 : i64, tpu.core_type = #tpu.core_type<tc>, window_params = [{transform_indices = @transform_0, window_bounds = array<i64: 8, 128>}, {pipeline_mode = #tpu.pipeline_mode<synchronous>, transform_indices = @transform_1, window_bounds = array<i64: 128, 128>}, {pipeline_mode = #tpu.pipeline_mode<synchronous>, transform_indices = @transform_2, window_bounds = array<i64: 1, 128>}, {pipeline_mode = #tpu.pipeline_mode<synchronous>, transform_indices = @transform_3, window_bounds = array<i64: 128, 128>}, {pipeline_mode = #tpu.pipeline_mode<synchronous>, transform_indices = @transform_4, window_bounds = array<i64: 1, 128>}, {pipeline_mode = #tpu.pipeline_mode<synchronous>, transform_indices = @transform_5, window_bounds = array<i64: 128, 128>}, {pipeline_mode = #tpu.pipeline_mode<synchronous>, transform_indices = @transform_6, window_bounds = array<i64: 1, 128>}, {transform_indices = @transform_7, window_bounds = array<i64: 8, 128>}]} {
    %c0 = arith.constant 0 : index
    %c0_0 = arith.constant 0 : index
    %0 = vector.load %arg1[%c0, %c0_0] : memref<8x128xf32, #tpu.memory_space<vmem>>, vector<8x128xf32>
    %c0_1 = arith.constant 0 : index
    %c0_2 = arith.constant 0 : index
    %1 = vector.load %arg2[%c0_1, %c0_2] : memref<128x128xf32, #tpu.memory_space<vmem>>, vector<128x128xf32>
    %cst = arith.constant dense<0.000000e+00> : vector<8x128xf32>
    %2 = tpu.matmul %0, %1, %cst {dimension_numbers = #tpu.dot_dimension_numbers<[1], [0], [0], [1], [0, 0, 1, 1], [], []>} : vector<8x128xf32>, vector<128x128xf32>, vector<8x128xf32> -> vector<8x128xf32>
    %c0_3 = arith.constant 0 : index
    %c0_4 = arith.constant 0 : index
    %3 = vector.load %arg3[%c0_3, %c0_4] : memref<1x128xf32, #tpu.memory_space<vmem>>, vector<1x128xf32>
    %4 = vector.broadcast %3 : vector<1x128xf32> to vector<8x128xf32>
    %5 = arith.addf %2, %4 : vector<8x128xf32>
    %cst_5 = arith.constant 0.000000e+00 : f32
    %6 = vector.broadcast %cst_5 : f32 to vector<8x128xf32>
    %7 = arith.maximumf %5, %6 : vector<8x128xf32>
    %c0_6 = arith.constant 0 : index
    %c0_7 = arith.constant 0 : index
    %8 = vector.load %arg4[%c0_6, %c0_7] : memref<128x128xf32, #tpu.memory_space<vmem>>, vector<128x128xf32>
    %cst_8 = arith.constant dense<0.000000e+00> : vector<8x128xf32>
    %9 = tpu.matmul %7, %8, %cst_8 {dimension_numbers = #tpu.dot_dimension_numbers<[1], [0], [0], [1], [0, 0, 1, 1], [], []>} : vector<8x128xf32>, vector<128x128xf32>, vector<8x128xf32> -> vector<8x128xf32>
    %c0_9 = arith.constant 0 : index
    %c0_10 = arith.constant 0 : index
    %10 = vector.load %arg5[%c0_9, %c0_10] : memref<1x128xf32, #tpu.memory_space<vmem>>, vector<1x128xf32>
    %11 = vector.broadcast %10 : vector<1x128xf32> to vector<8x128xf32>
    %12 = arith.addf %9, %11 : vector<8x128xf32>
    %c0_11 = arith.constant 0 : index
    %c0_12 = arith.constant 0 : index
    %13 = vector.load %arg6[%c0_11, %c0_12] : memref<128x128xf32, #tpu.memory_space<vmem>>, vector<128x128xf32>
    %cst_13 = arith.constant dense<0.000000e+00> : vector<8x128xf32>
    %14 = tpu.matmul %0, %13, %cst_13 {dimension_numbers = #tpu.dot_dimension_numbers<[1], [0], [0], [1], [0, 0, 1, 1], [], []>} : vector<8x128xf32>, vector<128x128xf32>, vector<8x128xf32> -> vector<8x128xf32>
    %c0_14 = arith.constant 0 : index
    %c0_15 = arith.constant 0 : index
    %15 = vector.load %arg7[%c0_14, %c0_15] : memref<1x128xf32, #tpu.memory_space<vmem>>, vector<1x128xf32>
    %16 = vector.broadcast %15 : vector<1x128xf32> to vector<8x128xf32>
    %17 = arith.addf %14, %16 : vector<8x128xf32>
    %18 = arith.addf %12, %17 : vector<8x128xf32>
    %cst_16 = arith.constant 0.000000e+00 : f32
    %19 = vector.broadcast %cst_16 : f32 to vector<8x128xf32>
    %20 = arith.maximumf %18, %19 : vector<8x128xf32>
    %c0_17 = arith.constant 0 : index
    %c0_18 = arith.constant 0 : index
    %21 = vector.load %arg8[%c0_17, %c0_18] : memref<8x128xf32, #tpu.memory_space<vmem>>, vector<8x128xf32>
    tpu.vector_store %arg8[%c0_17, %c0_18], %20 {strides = array<i32>} : memref<8x128xf32, #tpu.memory_space<vmem>>, vector<8x128xf32>,
    return
  }
  func.func @transform_0(%arg0: i32) -> (i32, i32) {
    %c0_i32 = arith.constant 0 : i32
    %c0_i32_0 = arith.constant 0 : i32
    return %arg0, %c0_i32 : i32, i32
  }
  func.func @transform_1(%arg0: i32) -> (i32, i32) {
    %c0_i32 = arith.constant 0 : i32
    %c0_i32_0 = arith.constant 0 : i32
    %c0_i32_1 = arith.constant 0 : i32
    return %c0_i32, %c0_i32_0 : i32, i32
  }
  func.func @transform_2(%arg0: i32) -> (i32, i32) {
    %c0_i32 = arith.constant 0 : i32
    %c0_i32_0 = arith.constant 0 : i32
    %c0_i32_1 = arith.constant 0 : i32
    return %c0_i32, %c0_i32_0 : i32, i32
  }
  func.func @transform_3(%arg0: i32) -> (i32, i32) {
    %c0_i32 = arith.constant 0 : i32
    %c0_i32_0 = arith.constant 0 : i32
    %c0_i32_1 = arith.constant 0 : i32
    return %c0_i32, %c0_i32_0 : i32, i32
  }
  func.func @transform_4(%arg0: i32) -> (i32, i32) {
    %c0_i32 = arith.constant 0 : i32
    %c0_i32_0 = arith.constant 0 : i32
    %c0_i32_1 = arith.constant 0 : i32
    return %c0_i32, %c0_i32_0 : i32, i32
  }
  func.func @transform_5(%arg0: i32) -> (i32, i32) {
    %c0_i32 = arith.constant 0 : i32
    %c0_i32_0 = arith.constant 0 : i32
    %c0_i32_1 = arith.constant 0 : i32
    return %c0_i32, %c0_i32_0 : i32, i32
  }
  func.func @transform_6(%arg0: i32) -> (i32, i32) {
    %c0_i32 = arith.constant 0 : i32
    %c0_i32_0 = arith.constant 0 : i32
    %c0_i32_1 = arith.constant 0 : i32
    return %c0_i32, %c0_i32_0 : i32, i32
  }
  func.func @transform_7(%arg0: i32) -> (i32, i32) {
    %c0_i32 = arith.constant 0 : i32
    %c0_i32_0 = arith.constant 0 : i32
    return %arg0, %c0_i32 : i32, i32
  }
}

</mosaic_0001>

<bundles_post_ra>
// kernel: residual_forward.1
= control target key start
LH: loop header
LB: loop body
LE: loop exit
PB: predicated region body
PF: predicated region fallthrough
CT: control target
= control target key end

     0   :  { %12 = vsyncpa [#allocation3], 0  ;;  %s861_s0 = inlined_call_operand.vmem [shape: f32[8,128], index: 0, kind: input, shape index: {}]   ;;  %s862_s1 = inlined_call_operand.hbm [shape: f32[128,128], index: 1, kind: input, shape index: {}]   ;;  %s863_s2 = inlined_call_operand.vmem [shape: f32[1,128], index: 2, kind: input, shape index: {}]   ;;  %s864_s3 = inlined_call_operand.hbm [shape: f32[128,128], index: 3, kind: input, shape index: {}]   ;;  %s865_s4 = inlined_call_operand.vmem [shape: f32[1,128], index: 4, kind: input, shape index: {}]   ;;  %s866_s5 = inlined_call_operand.hbm [shape: f32[128,128], index: 5, kind: input, shape index: {}]   ;;  %s867_s6 = inlined_call_operand.vmem [shape: f32[1,128], index: 6, kind: input, shape index: {}]   ;;  %s868_s7 = inlined_call_operand.hbm [shape: f32[8,128], index: 7, kind: output, shape index: {}]  }
   0x1   :  { %13 = vsyncpa [#allocation6], 0 }
   0x2   :  { %14 = vsyncpa [#allocation4], 0  ;;  %s706_s24 = smov [#allocation5]   ;;  %s707_s26 = smov [#allocation2]  }
   0x3   :  { %s36_s25 = sshll.u32 %s706_s24, 4  ;;  %s22_s27 = sshll.u32 %s707_s26, 4  ;;  %s37_s25 = int_to_ptr.vmem [resolvable:$true] %s36_s25  ;;  %s755_s27 = int_to_ptr.vmem [resolvable:$true] %s22_s27 }
   0x4   :  { %s612_s30 = scalar_lea.hbm %s864_s3, 2048 }
   0x5   :  { %p613_p0 = scmp.ne.s32.totalorder %s864_s3, %s612_s30  ;;  %p616_p1 = scmp.lt.u32.totalorder %s612_s30, %s864_s3 }
   0x7   :  { %p618_p2 = pnand %p616_p1, %p613_p0 }
   0x9   :  { %621 = shalt.err (!%p618_p2)
}
   0xa   :  { %s622_s12 = scalar_lea.vmem %s37_s25, 2048  ;;  %p627_p4 = scmp.lt.s32.totalorder %s37_s25, %s37_s25 }
   0xb   :  { %p623_p3 = scmp.ne.s32.totalorder %s37_s25, %s622_s12  ;;  %p628_p5 = scmp.lt.s32.totalorder %s622_s12, %s622_s12 }
   0xd   :  { %p629_p6 = por %p628_p5, %p627_p4 }
   0xf   :  { %p630_p7 = pnand %p629_p6, %p623_p3 }
  0x11   :  { %633 = shalt.err (!%p630_p7)
}
  0x12   :  { %s708_s13 = smov 128   ;;  %s709_s14 = smov 8  }
  0x13   :  { %42 = dma.hbm_to_vmem [thread:$0]  %s864_s3, 2048, %s37_s25, [#allocation6], %s708_s13, %s708_s13, %s709_s14  }
  0x14   :  { %s634_s19 = scalar_lea.hbm %s862_s1, 2048 }
  0x15   :  { %p635_p8 = scmp.ne.s32.totalorder %s862_s1, %s634_s19  ;;  %p638_p9 = scmp.lt.u32.totalorder %s634_s19, %s862_s1 }
  0x17   :  { %p640_p10 = pnand %p638_p9, %p635_p8 }
  0x19   :  { %643 = shalt.err (!%p640_p10)
}
  0x1a   :  { %s644_s24 = scalar_lea.vmem %s755_s27, 2048  ;;  %p649_p12 = scmp.lt.s32.totalorder %s755_s27, %s755_s27 }
  0x1b   :  { %p645_p11 = scmp.ne.s32.totalorder %s755_s27, %s644_s24  ;;  %p650_p13 = scmp.lt.s32.totalorder %s644_s24, %s644_s24 }
  0x1d   :  { %p651_p0 = por %p650_p13, %p649_p12 }
  0x1f   :  { %p652_p1 = pnand %p651_p0, %p645_p11 }
  0x21   :  { %655 = shalt.err (!%p652_p1)
}
  0x22   :  { %28 = dma.hbm_to_vmem [thread:$0]  %s862_s1, 2048, %s755_s27, [#allocation3], %s708_s13, %s708_s13, %s709_s14  }
  0x23   :  { %s710_s26 = smov [#allocation7]   ;;  %s656_s8 = scalar_lea.hbm %s866_s5, 2048 }
  0x24   :  { %s50_s28 = sshll.u32 %s710_s26, 4  ;;  %p657_p2 = scmp.ne.s32.totalorder %s866_s5, %s656_s8  ;;  %s51_s28 = int_to_ptr.vmem [resolvable:$true] %s50_s28 }
  0x25   :  { %p660_p3 = scmp.lt.u32.totalorder %s656_s8, %s866_s5 }
  0x27   :  { %p662_p4 = pnand %p660_p3, %p657_p2 }
  0x29   :  { %665 = shalt.err (!%p662_p4)
}
  0x2a   :  { %s666_s15 = scalar_lea.vmem %s51_s28, 2048  ;;  %p671_p6 = scmp.lt.s32.totalorder %s51_s28, %s51_s28 }
  0x2b   :  { %p667_p5 = scmp.ne.s32.totalorder %s51_s28, %s666_s15  ;;  %p672_p7 = scmp.lt.s32.totalorder %s666_s15, %s666_s15 }
  0x2d   :  { %p673_p8 = por %p672_p7, %p671_p6 }
  0x2f   :  { %p674_p9 = pnand %p673_p8, %p667_p5 }
  0x31   :  { %677 = shalt.err (!%p674_p9)
}
  0x32   :  { %56 = dma.hbm_to_vmem [thread:$0]  %s866_s5, 2048, %s51_s28, [#allocation6], %s708_s13, %s708_s13, %s709_s14  }
  0x33   :  { %700 = dma.done.wait [#allocation3], 2048  }
  0x34   :  { %701 = vsyncadd [#allocation3], 4294965248 }
  0x35   :  { %702 = dma.done.wait [#allocation6], 4096  }
  0x36   :  { %703 = vsyncadd [#allocation6], 4294963200  ;;  %v711_v0 = vmov 0.0|0.0   ;;  %vm712_vm0 = vmmov 0   ;;  %v713_v1 = vmov 0.0   ;;  %v69_v2 = vld [vmem:[#allocation2] sm:$0xff] }
  0x37   :  { %527 = vmatprep.subr.bf16.mxu0 %v711_v0  ;;  %454 = vmatprep.mubr.msk.f32.mxu0 %vm712_vm0, %v713_v1  ;;  %v70_v3 = vld [vmem:[#allocation2 + $0x8] sm:$0xff]  ;;  %v71_v4 = vld [vmem:[#allocation2 + $0x10] sm:$0xff]  ;;  %v72_v6 = vld [vmem:[#allocation2 + $0x18] sm:$0xff]  ;;  %s714_s19 = smov [#allocation8]  }
  0x38   :  { %551 = vmatprep.subr.bf16.mxu1 %v711_v0  ;;  %489 = vmatprep.mubr.msk.f32.mxu1 %vm712_vm0, %v713_v1  ;;  %v528_v5 = vpack.c.bf16 %v70_v3, %v69_v2  ;;  %v531_v7 = vpack.c.bf16 %v72_v6, %v71_v4  ;;  %v73_v8 = vld [vmem:[#allocation2 + $0x20] sm:$0xff]  ;;  %v74_v9 = vld [vmem:[#allocation2 + $0x28] sm:$0xff]  ;;  %v165_v12 = vld [vmem:[#allocation5 + $0x10] sm:$0xff]  ;;  %s358_s20 = sshll.u32 %s714_s19, 4  ;;  %s359_s20 = int_to_ptr.vmem [resolvable:$true] %s358_s20 }
  0x39   :  { %v163_v10 = vld [vmem:[#allocation5] sm:$0xff]  ;;  %v164_v11 = vld [vmem:[#allocation5 + $0x8] sm:$0xff]  ;;  %v166_v13 = vld [vmem:[#allocation5 + $0x18] sm:$0xff]  ;;  %v534_v14 = vpack.c.bf16 %v74_v9, %v73_v8  ;;  %s678_s21 = scalar_lea.vmem %s359_s20, 128  ;;  %p683_p11 = scmp.lt.s32.totalorder %s359_s20, %s359_s20 }
  0x3a   :  { %529 = vmatpush3.bf16.msra.mxu0 %v528_v5  ;;  %v552_v15 = vpack.c.bf16 %v164_v11, %v163_v10  ;;  %v75_v16 = vld [vmem:[#allocation2 + $0x30] sm:$0xff]  ;;  %v76_v17 = vld [vmem:[#allocation2 + $0x38] sm:$0xff]  ;;  %v555_v18 = vpack.c.bf16 %v166_v13, %v165_v12  ;;  %v167_v19 = vld [vmem:[#allocation5 + $0x20] sm:$0xff]  ;;  %p679_p10 = scmp.ne.s32.totalorder %s359_s20, %s678_s21  ;;  %p684_p12 = scmp.lt.s32.totalorder %s678_s21, %s678_s21 }
  0x3b   :  { %530 = vmatprep.subr.bf16.mxu0 %v711_v0  ;;  %v168_v20 = vld [vmem:[#allocation5 + $0x28] sm:$0xff]  ;;  %v537_v21 = vpack.c.bf16 %v76_v17, %v75_v16  ;;  %v77_v22 = vld [vmem:[#allocation2 + $0x40] sm:$0xff]  ;;  %v169_v25 = vld [vmem:[#allocation5 + $0x30] sm:$0xff] }
  0x3c   :  { %553 = vmatpush3.bf16.msra.mxu1 %v552_v15  ;;  %v78_v23 = vld [vmem:[#allocation2 + $0x48] sm:$0xff]  ;;  %v558_v24 = vpack.c.bf16 %v168_v20, %v167_v19  ;;  %v170_v26 = vld [vmem:[#allocation5 + $0x38] sm:$0xff]  ;;  %v79_v28 = vld [vmem:[#allocation2 + $0x50] sm:$0xff]  ;;  %p685_p13 = por %p684_p12, %p683_p11 }
  0x3d   :  { %554 = vmatprep.subr.bf16.mxu1 %v711_v0  ;;  %v540_v27 = vpack.c.bf16 %v78_v23, %v77_v22  ;;  %v80_v29 = vld [vmem:[#allocation2 + $0x58] sm:$0xff]  ;;  %v561_v30 = vpack.c.bf16 %v170_v26, %v169_v25  ;;  %v171_v31 = vld [vmem:[#allocation5 + $0x40] sm:$0xff]  ;;  %v172_v32 = vld [vmem:[#allocation5 + $0x48] sm:$0xff] }
  0x3e   :  { %532 = vmatpush3.bf16.msra.mxu0 %v531_v7  ;;  %v543_v33 = vpack.c.bf16 %v80_v29, %v79_v28  ;;  %v81_v34 = vld [vmem:[#allocation2 + $0x60] sm:$0xff]  ;;  %v82_v35 = vld [vmem:[#allocation2 + $0x68] sm:$0xff]  ;;  %v564_v36 = vpack.c.bf16 %v172_v32, %v171_v31  ;;  %v173_v37 = vld [vmem:[#allocation5 + $0x50] sm:$0xff]  ;;  %p686_p0 = pnand %p685_p13, %p679_p10 }
  0x3f   :  { %533 = vmatprep.subr.bf16.mxu0 %v711_v0  ;;  %v174_v38 = vld [vmem:[#allocation5 + $0x58] sm:$0xff]  ;;  %v546_v39 = vpack.c.bf16 %v82_v35, %v81_v34  ;;  %v83_v40 = vld [vmem:[#allocation2 + $0x70] sm:$0xff]  ;;  %v175_v43 = vld [vmem:[#allocation5 + $0x60] sm:$0xff] }
  0x40   :  { %556 = vmatpush3.bf16.msra.mxu1 %v555_v18  ;;  %v84_v41 = vld [vmem:[#allocation2 + $0x78] sm:$0xff]  ;;  %v567_v42 = vpack.c.bf16 %v174_v38, %v173_v37  ;;  %v176_v44 = vld [vmem:[#allocation5 + $0x68] sm:$0xff]  ;;  %v68_v47 = vld [vmem:[%s861_s0] sm:$0xff] }
  0x41   :  { %557 = vmatprep.subr.bf16.mxu1 %v711_v0  ;;  %v549_v45 = vpack.c.bf16 %v84_v41, %v83_v40  ;;  %v570_v46 = vpack.c.bf16 %v176_v44, %v175_v43  ;;  %v177_v48 = vld [vmem:[#allocation5 + $0x70] sm:$0xff]  ;;  %v178_v49 = vld [vmem:[#allocation5 + $0x78] sm:$0xff]  ;;  %v368_v51 = vld [vmem:[%s863_s2] ss:$0 sm:$0xff] }
  0x42   :  { %535 = vmatpush3.bf16.msra.mxu0 %v534_v14  ;;  %v573_v50 = vpack.c.bf16 %v178_v49, %v177_v48  ;;  %v256_v52 = vld [vmem:[#allocation7] sm:$0xff]  ;;  %v257_v53 = vld [vmem:[#allocation7 + $0x8] sm:$0xff]  ;;  %v258_v59 = vld [vmem:[#allocation7 + $0x10] sm:$0xff] }
  0x43   :  { %536 = vmatprep.subr.bf16.mxu0 %v711_v0  ;;  %v576_v57 = vpack.c.bf16 %v257_v53, %v256_v52  ;;  %v259_v60 = vld [vmem:[#allocation7 + $0x18] sm:$0xff]  ;;  %v260_v62 = vld [vmem:[#allocation7 + $0x20] sm:$0xff]  ;;  %v261_v63 = vld [vmem:[#allocation7 + $0x28] sm:$0xff] }
  0x44   :  { %559 = vmatpush3.bf16.msra.mxu1 %v558_v24  ;;  %v579_v61 = vpack.c.bf16 %v259_v60, %v258_v59  ;;  %v582_v2 = vpack.c.bf16 %v261_v63, %v260_v62  ;;  %v262_v3 = vld [vmem:[#allocation7 + $0x30] sm:$0xff]  ;;  %v263_v4 = vld [vmem:[#allocation7 + $0x38] sm:$0xff]  ;;  %v264_v6 = vld [vmem:[#allocation7 + $0x40] sm:$0xff] }
  0x45   :  { %560 = vmatprep.subr.bf16.mxu1 %v711_v0  ;;  %v585_v5 = vpack.c.bf16 %v263_v4, %v262_v3  ;;  %v265_v7 = vld [vmem:[#allocation7 + $0x48] sm:$0xff]  ;;  %v267_v9 = vld [vmem:[#allocation7 + $0x58] sm:$0xff]  ;;  %v268_v11 = vld [vmem:[#allocation7 + $0x60] sm:$0xff] }
  0x46   :  { %538 = vmatpush3.bf16.msra.mxu0 %v537_v21  ;;  %v588_v8 = vpack.c.bf16 %v265_v7, %v264_v6  ;;  %v269_v12 = vld [vmem:[#allocation7 + $0x68] sm:$0xff]  ;;  %v270_v14 = vld [vmem:[#allocation7 + $0x70] sm:$0xff]  ;;  %v271_v15 = vld [vmem:[#allocation7 + $0x78] sm:$0xff] }
  0x47   :  { %539 = vmatprep.subr.bf16.mxu0 %v711_v0  ;;  %v594_v13 = vpack.c.bf16 %v269_v12, %v268_v11  ;;  %v597_v16 = vpack.c.bf16 %v271_v15, %v270_v14  ;;  %v369_v17 = vld [vmem:[%s865_s4] ss:$0 sm:$0xff] }
  0x48   :  { %562 = vmatpush3.bf16.msra.mxu1 %v561_v30  ;;  %v370_v18 = vld [vmem:[%s867_s6] ss:$0 sm:$0xff] }
  0x49   :  { %563 = vmatprep.subr.bf16.mxu1 %v711_v0  ;;  %v599_v19 = vadd.f32 %v370_v18, %v369_v17 }
  0x4a   :  { %541 = vmatpush3.bf16.msra.mxu0 %v540_v27 }
  0x4b   :  { %542 = vmatprep.subr.bf16.mxu0 %v711_v0 }
  0x4c   :  { %565 = vmatpush3.bf16.msra.mxu1 %v564_v36 }
  0x4d   :  { %566 = vmatprep.subr.bf16.mxu1 %v711_v0 }
  0x4e   :  { %544 = vmatpush3.bf16.msra.mxu0 %v543_v33 }
  0x4f   :  { %545 = vmatprep.subr.bf16.mxu0 %v711_v0 }
  0x50   :  { %568 = vmatpush3.bf16.msra.mxu1 %v567_v42 }
  0x51   :  { %569 = vmatprep.subr.bf16.mxu1 %v711_v0 }
  0x52   :  { %547 = vmatpush3.bf16.msra.mxu0 %v546_v39 }
  0x53   :  { %548 = vmatprep.subr.bf16.mxu0 %v711_v0 }
  0x54   :  { %571 = vmatpush3.bf16.msra.mxu1 %v570_v46 }
  0x55   :  { %572 = vmatprep.subr.bf16.mxu1 %v711_v0 }
  0x56   :  { %550 = vmatpush3.bf16.msra.mxu0 %v549_v45 }
  0x58   :  { %574 = vmatpush3.bf16.msra.mxu1 %v573_v50 }
  0x59   :  { %455 = vmatmul.mubr.f32.vlgmr.msra.gmra.mrb[0].mxu0 %v68_v47  ;;  %575 = vmatprep.subr.bf16.mxu1 %v711_v0 }
 0x12c   :  { %v158_v54 = vpop.f32.mrb[0].mxu0 }
 0x12d   :  { %v159_v55 = vadd.f32 %v368_v51, %v158_v54  ;;  %v456_v56 = vpop.f32.mrb[1].mxu0 }
 0x12f   :  { %v162_v58 = vmax.f32 %v159_v55, 0.0 }
 0x131   :  { %490 = vmatmul.mubr.f32.vlgmr.msra.gmra.mrb[0].mxu1 %v162_v58 }
 0x132   :  { %577 = vmatpush3.bf16.msra.mxu1 %v576_v57  ;;  %524 = vmatprep.mubr.msk.f32.mxu1 %vm712_vm0, %v713_v1  ;;  %v266_v1 = vld [vmem:[#allocation7 + $0x50] sm:$0xff] }
 0x133   :  { %578 = vmatprep.subr.bf16.mxu1 %v711_v0  ;;  %v591_v10 = vpack.c.bf16 %v267_v9, %v266_v1 }
 0x136   :  { %580 = vmatpush3.bf16.msra.mxu1 %v579_v61 }
 0x137   :  { %581 = vmatprep.subr.bf16.mxu1 %v711_v0 }
 0x13a   :  { %583 = vmatpush3.bf16.msra.mxu1 %v582_v2 }
 0x13b   :  { %584 = vmatprep.subr.bf16.mxu1 %v711_v0 }
 0x13e   :  { %586 = vmatpush3.bf16.msra.mxu1 %v585_v5 }
 0x13f   :  { %587 = vmatprep.subr.bf16.mxu1 %v711_v0 }
 0x142   :  { %589 = vmatpush3.bf16.msra.mxu1 %v588_v8 }
 0x143   :  { %590 = vmatprep.subr.bf16.mxu1 %v711_v0 }
 0x146   :  { %592 = vmatpush3.bf16.msra.mxu1 %v591_v10 }
 0x147   :  { %593 = vmatprep.subr.bf16.mxu1 %v711_v0 }
 0x14a   :  { %595 = vmatpush3.bf16.msra.mxu1 %v594_v13 }
 0x14b   :  { %596 = vmatprep.subr.bf16.mxu1 %v711_v0 }
 0x14e   :  { %598 = vmatpush3.bf16.msra.mxu1 %v597_v16 }
 0x151   :  { %525 = vmatmul.mubr.f32.vlgmr.msra.gmra.mrb[0].mxu1 %v68_v47 }
 0x224   :  { %v345_v20 = vpop.f32.mrb[0].mxu1 }
 0x225   :  { %v600_v21 = vadd.f32 %v599_v19, %v345_v20  ;;  %v526_v22 = vpop.f32.mrb[1].mxu1 }
 0x227   :  { %v350_v23 = vmax.f32 %v600_v21, 0.0 }
 0x229   :  { %351 = vst [vmem:[#allocation8] sm:$0xff] %v350_v23 }
 0x22a   :  { %689 = shalt.err (!%p686_p0)
}
 0x22b   :  { %s690_s6 = scalar_lea.hbm %s868_s7, 128 }
 0x22c   :  { %p691_p1 = scmp.ne.s32.totalorder %s868_s7, %s690_s6  ;;  %p694_p2 = scmp.lt.u32.totalorder %s690_s6, %s868_s7 }
 0x22e   :  { %p696_p3 = pnand %p694_p2, %p691_p1 }
 0x230   :  { %699 = shalt.err (!%p696_p3)
}
 0x231   :  { %361 = dma.vmem_to_hbm [thread:$0]  %s359_s20, 128, %s868_s7, [#allocation4]  }
 0x232   :  { %704 = dma.done.wait [#allocation4], 128  }
 0x233   :  { %705 = vsyncadd [#allocation4], 4294967168 }
 0x234   :  { %365 = vsyncpa [#allocation3], 1 }
 0x235   :  { %366 = vsyncpa [#allocation6], 1 }
 0x236   :  { %367 = vsyncpa [#allocation4], 1 }

</bundles_post_ra>
